<compile_context>
chip_gen: v7x
topology: tpu7x:2x2x1
jax: 0.10.0
libtpu: 0.0.40
codegen_flags: <defaults>
</compile_context>

<pallas_src>
import jax
import jax.numpy as jnp
from jax.experimental import pallas as pl
from jax.experimental.pallas import tpu as pltpu


def _pick_block(dim: int, unit: int, cap: int) -> int:
    """Largest multiple of `unit` that divides `dim` and is <= `cap`.

    Falls back to the full dimension (a full-extent block is always legal
    w.r.t. the (8, 128) tiling constraint)."""
    if dim <= cap:
        return dim
    best = None
    t = unit
    while t <= cap:
        if dim % t == 0:
            best = t
        t += unit
    return best if best is not None else dim


def mc_head_kernel(h_ref, m_ref, w_ref, b_ref, o_ref, acc_ref):
    # h_ref: (TR, TS, E) native dtype   m_ref: (TR, TS) native dtype
    # w_ref: (1, E) VMEM (lane-dense)   b_ref: (1, 1) SMEM scalar
    # o_ref: (TR, 1) output             acc_ref: (TR, 1) f32 VMEM scratch
    s_idx = pl.program_id(1)

    @pl.when(s_idx == 0)
    def _init():
        acc_ref[...] = jnp.zeros_like(acc_ref)

    h = h_ref[...].astype(jnp.float32)            # (TR, TS, E)
    w = w_ref[...].astype(jnp.float32)            # (1, E)
    m = m_ref[...].astype(jnp.float32)            # (TR, TS)

    # Reordered math: project onto the weight along E first (VPU mul + lane reduce),
    # then the mask multiply is a tiny (TR, TS) op, then reduce over S.
    hw = jnp.sum(h * w[None, :, :], axis=-1)      # (TR, TS)
    acc_ref[...] += jnp.sum(hw * m, axis=-1, keepdims=True)  # (TR, 1), f32 accumulate

    @pl.when(s_idx == pl.num_programs(1) - 1)
    def _finalize():
        # Bias added exactly once, in the finalize step.
        o_ref[...] = (acc_ref[...] + b_ref[0, 0]).astype(o_ref.dtype)


def multiple_choice_head(hidden_states, mask, weight, bias,
                         *, hidden_tile_bytes=4 * 1024 * 1024):
    """hidden_states: (B, C, S, E), mask: (B, C, S), weight: (1, E), bias: (1,)."""
    B, C, S, E = hidden_states.shape
    R = B * C

    # Row-flatten only; NO dtype upcast here (avoids an extra full HBM pass).
    h = hidden_states.reshape(R, S, E)
    m = mask.reshape(R, S)
    w = weight.reshape(1, E)          # PyTorch Linear weight is (out=1, in=E); keep lane-dense.
    b = bias.reshape(1, 1)

    itemsize = jnp.dtype(h.dtype).itemsize
    # Choose the sequence tile first (reduction axis), then the row tile, so one
    # hidden tile stays around `hidden_tile_bytes` (x2 for double buffering — well
    # under scoped VMEM on v5e/v6e/v7x).
    ts_cap = max(128, hidden_tile_bytes // max(1, 8 * E * itemsize))
    TS = _pick_block(S, 128, ts_cap)
    tr_cap = max(8, hidden_tile_bytes // max(1, TS * E * itemsize))
    TR = _pick_block(R, 8, tr_cap)

    grid = (R // TR, S // TS)

    out = pl.pallas_call(
        mc_head_kernel,
        out_shape=jax.ShapeDtypeStruct((R, 1), hidden_states.dtype),
        grid_spec=pltpu.PrefetchScalarGridSpec(
            num_scalar_prefetch=0,
            grid=grid,
            in_specs=[
                pl.BlockSpec((TR, TS, E), lambda r, s: (r, s, 0)),   # hidden tile
                pl.BlockSpec((TR, TS), lambda r, s: (r, s)),         # mask tile
                pl.BlockSpec((1, E), lambda r, s: (0, 0)),           # weight row (VMEM)
                pl.BlockSpec((1, 1), lambda r, s: (0, 0),
                             memory_space=pltpu.MemorySpace.SMEM),   # bias scalar
            ],
            out_specs=pl.BlockSpec((TR, 1), lambda r, s: (r, 0)),
            scratch_shapes=[pltpu.VMEM((TR, 1), jnp.float32)],
        ),
        compiler_params=pltpu.CompilerParams(
            # R axis parallel (megacore sharding on v7x), S reduction axis arbitrary.
            dimension_semantics=("parallel", "arbitrary"),
        ),
    )(h, m, w, b)

    return out.reshape(B, C)


if __name__ == "__main__":
    key = jax.random.PRNGKey(0)
    k_h, k_m, k_w, k_b = jax.random.split(key, 4)

    # Small shapes consistent with the module: batch=2, num_choices=3, seq=8, n_embd=32
    B, C, S, E = 2, 3, 8, 32

    hidden_states = jax.random.normal(k_h, (B, C, S, E), dtype=jnp.float32)
    # multiple_choice_token_mask: 0/1 mask over the sequence
    mask = (jax.random.uniform(k_m, (B, C, S)) > 0.5).astype(jnp.float32)

    # Parameters matching the PyTorch __init__ shapes:
    # nn.Linear(n_embd, 1): weight (1, E) ~ N(0, 0.02), bias (1,) ~ N(0, 1)
    weight = 0.02 * jax.random.normal(k_w, (1, E), dtype=jnp.float32)
    bias = jax.random.normal(k_b, (1,), dtype=jnp.float32)

    logits = multiple_choice_head(hidden_states, mask, weight, bias)
    logits = jax.block_until_ready(logits)

    # Pure-JAX reference for correctness
    pooled_ref = jnp.sum(hidden_states * mask[..., None], axis=-2)     # (B, C, E)
    logits_ref = jnp.squeeze(pooled_ref @ weight.T + bias, axis=-1)    # (B, C)

    assert logits.shape == (B, C)
    assert jnp.allclose(logits, logits_ref, atol=1e-5, rtol=1e-5), (
        f"mismatch: {logits} vs {logits_ref}"
    )
    print("KERNEL_OK")
</pallas_src>

<mosaic_0001>
module attributes {stable_mosaic.version = 11 : i64} {
  func.func @mc_head_kernel(%arg0: i32, %arg1: i32, %arg2: memref<6x8x32xf32, #tpu.memory_space<vmem>>, %arg3: memref<6x8xf32, #tpu.memory_space<vmem>>, %arg4: memref<1x32xf32, #tpu.memory_space<vmem>>, %arg5: memref<1x1xf32, #tpu.memory_space<smem>>, %arg6: memref<6x1xf32, #tpu.memory_space<vmem>>, %arg7: memref<6x1xf32, #tpu.memory_space<vmem>>) attributes {dimension_semantics = [#tpu.dimension_semantics<parallel>, #tpu.dimension_semantics<arbitrary>], iteration_bounds = array<i64: 1, 1>, scalar_prefetch = 0 : i64, scratch_operands = 1 : i64, tpu.core_type = #tpu.core_type<tc>, window_params = [{transform_indices = @transform_0, window_bounds = array<i64: 6, 8, 32>}, {transform_indices = @transform_1, window_bounds = array<i64: 6, 8>}, {pipeline_mode = #tpu.pipeline_mode<synchronous>, transform_indices = @transform_2, window_bounds = array<i64: 1, 32>}, {transform_indices = @transform_3, window_bounds = array<i64: 1, 1>}, {transform_indices = @transform_4, window_bounds = array<i64: 6, 1>}]} {
    %c0_i32 = arith.constant 0 : i32
    %0 = arith.cmpi eq, %arg1, %c0_i32 : i32
    %1 = arith.extui %0 : i1 to i32
    %c0_i32_0 = arith.constant 0 : i32
    %2 = arith.cmpi ne, %1, %c0_i32_0 : i32
    scf.if %2 {
      %cst_14 = arith.constant 0.000000e+00 : f32
      %19 = vector.broadcast %cst_14 : f32 to vector<6x1xf32>
      %c0_15 = arith.constant 0 : index
      %c0_16 = arith.constant 0 : index
      %20 = vector.load %arg7[%c0_15, %c0_16] : memref<6x1xf32, #tpu.memory_space<vmem>>, vector<6x1xf32>
      tpu.vector_store %arg7[%c0_15, %c0_16], %19 {strides = array<i32>} : memref<6x1xf32, #tpu.memory_space<vmem>>, vector<6x1xf32>,
    } else {
    }
    %c0 = arith.constant 0 : index
    %c0_1 = arith.constant 0 : index
    %c0_2 = arith.constant 0 : index
    %3 = vector.load %arg2[%c0, %c0_1, %c0_2] : memref<6x8x32xf32, #tpu.memory_space<vmem>>, vector<6x8x32xf32>
    %c0_3 = arith.constant 0 : index
    %c0_4 = arith.constant 0 : index
    %4 = vector.load %arg4[%c0_3, %c0_4] : memref<1x32xf32, #tpu.memory_space<vmem>>, vector<1x32xf32>
    %c0_5 = arith.constant 0 : index
    %c0_6 = arith.constant 0 : index
    %5 = vector.load %arg3[%c0_5, %c0_6] : memref<6x8xf32, #tpu.memory_space<vmem>>, vector<6x8xf32>
    %6 = vector.shape_cast %4 : vector<1x32xf32> to vector<1x1x32xf32>
    %7 = vector.broadcast %6 : vector<1x1x32xf32> to vector<6x8x32xf32>
    %8 = arith.mulf %3, %7 : vector<6x8x32xf32>
    %cst = arith.constant dense<0.000000e+00> : vector<6x8xf32>
    %9 = vector.multi_reduction <add>, %8, %cst [2] : vector<6x8x32xf32> to vector<6x8xf32>
    %c0_7 = arith.constant 0 : index
    %c0_8 = arith.constant 0 : index
    %10 = vector.load %arg7[%c0_7, %c0_8] : memref<6x1xf32, #tpu.memory_space<vmem>>, vector<6x1xf32>
    %11 = arith.mulf %9, %5 : vector<6x8xf32>
    %cst_9 = arith.constant dense<0.000000e+00> : vector<6xf32>
    %12 = vector.multi_reduction <add>, %11, %cst_9 [1] : vector<6x8xf32> to vector<6xf32>
    %13 = vector.shape_cast %12 : vector<6xf32> to vector<6x1xf32>
    %14 = arith.addf %10, %13 : vector<6x1xf32>
    %c0_10 = arith.constant 0 : index
    %c0_11 = arith.constant 0 : index
    %15 = vector.load %arg7[%c0_10, %c0_11] : memref<6x1xf32, #tpu.memory_space<vmem>>, vector<6x1xf32>
    tpu.vector_store %arg7[%c0_10, %c0_11], %14 {strides = array<i32>} : memref<6x1xf32, #tpu.memory_space<vmem>>, vector<6x1xf32>,
    %c0_i32_12 = arith.constant 0 : i32
    %16 = arith.cmpi eq, %arg1, %c0_i32_12 : i32
    %17 = arith.extui %16 : i1 to i32
    %c0_i32_13 = arith.constant 0 : i32
    %18 = arith.cmpi ne, %17, %c0_i32_13 : i32
    scf.if %18 {
      %c0_14 = arith.constant 0 : index
      %c0_15 = arith.constant 0 : index
      %19 = vector.load %arg7[%c0_14, %c0_15] : memref<6x1xf32, #tpu.memory_space<vmem>>, vector<6x1xf32>
      %c0_16 = arith.constant 0 : index
      %c0_17 = arith.constant 0 : index
      %20 = memref.load %arg5[%c0_16, %c0_17] : memref<1x1xf32, #tpu.memory_space<smem>>
      %21 = vector.broadcast %20 : f32 to vector<6x1xf32>
      %22 = arith.addf %19, %21 : vector<6x1xf32>
      %c0_18 = arith.constant 0 : index
      %c0_19 = arith.constant 0 : index
      %23 = vector.load %arg6[%c0_18, %c0_19] : memref<6x1xf32, #tpu.memory_space<vmem>>, vector<6x1xf32>
      tpu.vector_store %arg6[%c0_18, %c0_19], %22 {strides = array<i32>} : memref<6x1xf32, #tpu.memory_space<vmem>>, vector<6x1xf32>,
    } else {
    }
    return
  }
  func.func @transform_0(%arg0: i32, %arg1: i32) -> (i32, i32, i32) {
    %c0_i32 = arith.constant 0 : i32
    %c0_i32_0 = arith.constant 0 : i32
    return %arg0, %arg1, %c0_i32 : i32, i32, i32
  }
  func.func @transform_1(%arg0: i32, %arg1: i32) -> (i32, i32) {
    %c0_i32 = arith.constant 0 : i32
    return %arg0, %arg1 : i32, i32
  }
  func.func @transform_2(%arg0: i32, %arg1: i32) -> (i32, i32) {
    %c0_i32 = arith.constant 0 : i32
    %c0_i32_0 = arith.constant 0 : i32
    %c0_i32_1 = arith.constant 0 : i32
    return %c0_i32, %c0_i32_0 : i32, i32
  }
  func.func @transform_3(%arg0: i32, %arg1: i32) -> (i32, i32) {
    %c0_i32 = arith.constant 0 : i32
    %c0_i32_0 = arith.constant 0 : i32
    %c0_i32_1 = arith.constant 0 : i32
    return %c0_i32, %c0_i32_0 : i32, i32
  }
  func.func @transform_4(%arg0: i32, %arg1: i32) -> (i32, i32) {
    %c0_i32 = arith.constant 0 : i32
    %c0_i32_0 = arith.constant 0 : i32
    return %arg0, %c0_i32 : i32, i32
  }
}

</mosaic_0001>

<bundles_post_ra>
// kernel: tpu_custom_call.1
= control target key start
LH: loop header
LB: loop body
LE: loop exit
PB: predicated region body
PF: predicated region fallthrough
CT: control target
= control target key end

     0   :  { %10 = vsyncpa [#allocation5], 0  ;;  %s357_s0 = inlined_call_operand.hbm [shape: f32[6,8,32], index: 0, kind: input, shape index: {}]   ;;  %s358_s1 = inlined_call_operand.hbm [shape: f32[6,8], index: 1, kind: input, shape index: {}]   ;;  %s359_s2 = inlined_call_operand.vmem [shape: f32[1,32], index: 2, kind: input, shape index: {}]   ;;  %s360_s3 = inlined_call_operand.<no memory space> [shape: f32[1,1], index: 3, kind: input, shape index: {}]   ;;  %s361_s4 = inlined_call_operand.vmem [shape: f32[6,1], index: 4, kind: output, shape index: {}]  }
   0x1   :  { %11 = vsyncpa [#allocation7], 0  ;;  %s284_s15 = smov [#allocation4]   ;;  %s236_s19 = scalar_lea.hbm %s357_s0, 768 }
   0x2   :  { %s17_s16 = sshll.u32 %s284_s15, 4  ;;  %p237_p0 = scmp.ne.s32.totalorder %s357_s0, %s236_s19  ;;  %s18_s16 = int_to_ptr.vmem [resolvable:$true] %s17_s16 }
   0x3   :  { %p240_p1 = scmp.lt.u32.totalorder %s236_s19, %s357_s0 }
   0x5   :  { %p242_p2 = pnand %p240_p1, %p237_p0 }
   0x7   :  { %245 = shalt.err (!%p242_p2)
}
   0x8   :  { %s246_s24 = scalar_lea.vmem %s18_s16, 768  ;;  %p251_p4 = scmp.lt.s32.totalorder %s18_s16, %s18_s16 }
   0x9   :  { %p247_p3 = scmp.ne.s32.totalorder %s18_s16, %s246_s24  ;;  %p252_p5 = scmp.lt.s32.totalorder %s246_s24, %s246_s24 }
   0xb   :  { %p253_p6 = por %p252_p5, %p251_p4 }
   0xd   :  { %p254_p7 = pnand %p253_p6, %p247_p3 }
   0xf   :  { %257 = shalt.err (!%p254_p7)
}
  0x10   :  { %s285_s25 = smov 128   ;;  %s286_s26 = smov 8  }
  0x11   :  { %23 = dma.hbm_to_vmem [thread:$0]  %s357_s0, 768, %s18_s16, [#allocation5], %s285_s25, %s285_s25, %s286_s26  }
  0x12   :  { %s287_s29 = smov [#allocation6]   ;;  %s258_s7 = scalar_lea.hbm %s358_s1, 128 }
  0x13   :  { %s30_s30 = sshll.u32 %s287_s29, 4  ;;  %p259_p8 = scmp.ne.s32.totalorder %s358_s1, %s258_s7  ;;  %s31_s30 = int_to_ptr.vmem [resolvable:$true] %s30_s30 }
  0x14   :  { %p262_p9 = scmp.lt.u32.totalorder %s258_s7, %s358_s1 }
  0x16   :  { %p264_p10 = pnand %p262_p9, %p259_p8 }
  0x18   :  { %267 = shalt.err (!%p264_p10)
}
  0x19   :  { %s268_s12 = scalar_lea.vmem %s31_s30, 128  ;;  %p273_p12 = scmp.lt.s32.totalorder %s31_s30, %s31_s30 }
  0x1a   :  { %p269_p11 = scmp.ne.s32.totalorder %s31_s30, %s268_s12  ;;  %p274_p13 = scmp.lt.s32.totalorder %s268_s12, %s268_s12 }
  0x1c   :  { %p275_p0 = por %p274_p13, %p273_p12 }
  0x1e   :  { %p276_p1 = pnand %p275_p0, %p269_p11 }
  0x20   :  { %279 = shalt.err (!%p276_p1)
}
  0x21   :  { %33 = dma.hbm_to_vmem [thread:$0]  %s358_s1, 128, %s31_s30, [#allocation7]  }
  0x22   :  { %280 = dma.done.wait [#allocation5], 768  }
  0x23   :  { %281 = vsyncadd [#allocation5], 4294966528 }
  0x24   :  { %282 = dma.done.wait [#allocation7], 128  }
  0x25   :  { %283 = vsyncadd [#allocation7], 4294967168  ;;  %v52_v0 = vld [vmem:[#allocation4 + $0x10] sm:$0xff]  ;;  %v227_v1 = vld [vmem:[%s359_s2] ss:$0 sm:$0xff]  ;;  %vm70_vm0 = vcmask 261120   ;;  %v91_v19 = vlaneseq }
  0x26   :  { %v50_v2 = vld [vmem:[#allocation4] sm:$0xff]  ;;  %v66_v3 = vmul.f32 %v227_v1, %v52_v0  ;;  %v53_v5 = vld [vmem:[#allocation4 + $0x18] sm:$0xff]  ;;  %v51_v6 = vld [vmem:[#allocation4 + $0x8] sm:$0xff]  ;;  %v288_v30 = vmov 0   ;;  %vm48_vm1 = vcmask 5120   ;;  %v289_v55 = vmov 0.0  }
  0x27   :  { %v64_v4 = vmul.f32 %v227_v1, %v50_v2  ;;  %v67_v7 = vmul.f32 %v227_v1, %v53_v5  ;;  %v65_v8 = vmul.f32 %v227_v1, %v51_v6  ;;  %v55_v9 = vld [vmem:[#allocation4 + $0x28] sm:$0xff]  ;;  %v54_v10 = vld [vmem:[#allocation4 + $0x20] sm:$0xff]  ;;  %v92_v20 = vshrl.u32 %v91_v19, 7  ;;  %v57_v22 = vld [vmem:[#allocation6] sm:$0x3f]  ;;  %235 = vset.pattern.permute.xlu1 %v288_v30  ;;  %234 = vset.pattern.permute.xlu0 %v288_v30 }
  0x28   :  { %v77_v11 = vsel %vm70_vm0, %v66_v3, 0.0  ;;  %v69_v15 = vmul.f32 %v227_v1, %v55_v9  ;;  %v68_v16 = vmul.f32 %v227_v1, %v54_v10  ;;  %v170_v35 = vand.u32 127, %v91_v19  ;;  %49 = vst.msk [vmem:[#allocation2] sm:$0x3f] %vm48_vm1, %v289_v55 }
  0x29   :  { %v71_v12 = vsel %vm70_vm0, %v64_v4, 0.0  ;;  %78 = vadd.xlane.f32.xlu1 %v77_v11  ;;  %v80_v13 = vsel %vm70_vm0, %v67_v7, 0.0  ;;  %v74_v14 = vsel %vm70_vm0, %v65_v8, 0.0  ;;  %v100_v21 = vsub.s32 1, %v92_v20 }
  0x2a   :  { %72 = vadd.xlane.f32.xlu0 %v71_v12  ;;  %v86_v17 = vsel %vm70_vm0, %v69_v15, 0.0  ;;  %v83_v18 = vsel %vm70_vm0, %v68_v16, 0.0  ;;  %v107_v24 = vsub.s32 2, %v92_v20  ;;  %v93_v25 = vsub.s32 0, %v92_v20 }
  0x2b   :  { %v101_v23 = vrot.slane %v57_v22, %v100_v21  ;;  %v114_v27 = vsub.s32 3, %v92_v20  ;;  %v121_v29 = vsub.s32 4, %v92_v20  ;;  %v128_v32 = vsub.s32 5, %v92_v20 }
  0x2c   :  { %v108_v26 = vrot.slane %v57_v22, %v107_v24  ;;  %v94_v28 = vrot.slane %v57_v22, %v93_v25  ;;  %v173_v36 = vsub.s32 %v170_v35, %v92_v20  ;;  %vm195_vm2 = vcmask 1041409  }
  0x2d   :  { %81 = vadd.xlane.f32.xlu1 %v80_v13  ;;  %v115_v31 = vrot.slane %v57_v22, %v114_v27  ;;  %v122_v33 = vrot.slane %v57_v22, %v121_v29  ;;  %v129_v34 = vrot.slane %v57_v22, %v128_v32  ;;  %vm197_vm3 = vcmask 1042434  }
  0x2e   :  { %75 = vadd.xlane.f32.xlu0 %v74_v14  ;;  %vm199_vm4 = vcmask 1043459   ;;  %vm201_vm5 = vcmask 1044484   ;;  %vm203_vm6 = vcmask 1045509   ;;  %vm206_vm7 = vcmask 62464  }
  0x2f   :  { %v89_v10 = vld [vmem:[#allocation2] sm:$0x3f]  ;;  %v218_v13 = vstv %s360_s3 }
  0x31   :  { %87 = vadd.xlane.f32.xlu1 %v86_v17 }
  0x32   :  { %84 = vadd.xlane.f32.xlu0 %v83_v18 }
  0x42   :  { %103 = vbcast.lane.b32.xlu1 %v101_v23, 256 }
  0x46   :  { %110 = vbcast.lane.b32.xlu1 %v108_v26, 256 }
  0x48   :  { %96 = vbcast.lane.b32.xlu0 %v94_v28, 256 }
  0x4a   :  { %117 = vbcast.lane.b32.xlu1 %v115_v31, 256 }
  0x4c   :  { %124 = vbcast.lane.b32.xlu0 %v122_v33, 256 }
  0x4e   :  { %131 = vbcast.lane.b32.xlu1 %v129_v34, 256 }
  0xb6   :  { %v79_v37 = vpop.xlane.xlu1 %78 }
  0xb7   :  { %v73_v38 = vpop.xlane.xlu0 %72 }
  0xba   :  { %v82_v39 = vpop.xlane.xlu1 %81 }
  0xbb   :  { %v76_v40 = vpop.xlane.xlu0 %75 }
  0xbe   :  { %v88_v41 = vpop.xlane.xlu1 %87 }
  0xbf   :  { %v85_v42 = vpop.xlane.xlu0 %84 }
  0xc2   :  { %v104_v43 = vpop.permute.xlu1 %103 }
  0xc3   :  { %v97_v44 = vpop.permute.xlu0 %96  ;;  %v140_v45 = vmul.f32 %v104_v43, %v76_v40 }
  0xc4   :  { %v139_v46 = vmul.f32 %v97_v44, %v73_v38 }
  0xc5   :  { %155 = vperm.xlu1 %235, %v140_v45  }
  0xc6   :  { %152 = vperm.xlu0 %234, %v139_v46   ;;  %v111_v47 = vpop.permute.xlu1 %110 }
  0xc7   :  { %v141_v48 = vmul.f32 %v111_v47, %v79_v37  ;;  %v125_v49 = vpop.permute.xlu0 %124 }
  0xc8   :  { %v143_v51 = vmul.f32 %v125_v49, %v85_v42 }
  0xc9   :  { %158 = vperm.xlu1 %235, %v141_v48  }
  0xca   :  { %v118_v50 = vpop.permute.xlu1 %117 }
  0xcb   :  { %v142_v52 = vmul.f32 %v118_v50, %v82_v39 }
  0xcd   :  { %161 = vperm.xlu0 %234, %v142_v52   ;;  %164 = vperm.xlu1 %235, %v143_v51  }
  0xce   :  { %v132_v53 = vpop.permute.xlu1 %131 }
  0xcf   :  { %v144_v54 = vmul.f32 %v132_v53, %v88_v41 }
  0xd1   :  { %167 = vperm.xlu0 %234, %v144_v54  }
 0x144   :  { %v156_v56 = vpop.permute.xlu1 %155 }
 0x145   :  { %v153_v57 = vpop.permute.xlu0 %152  ;;  %v178_v59 = vrot.slane %v156_v56, %v173_v36 }
 0x146   :  { %v174_v60 = vrot.slane %v153_v57, %v173_v36 }
 0x148   :  { %v159_v58 = vpop.permute.xlu1 %158  ;;  %v196_v0 = vsel %vm195_vm2, %v178_v59, %v174_v60 }
 0x149   :  { %v182_v61 = vrot.slane %v159_v58, %v173_v36 }
 0x14b   :  { %v198_v2 = vsel %vm197_vm3, %v182_v61, %v196_v0 }
 0x14c   :  { %v165_v62 = vpop.permute.xlu1 %164  ;;  %v162_v63 = vpop.permute.xlu0 %161 }
 0x14d   :  { %v186_v1 = vrot.slane %v162_v63, %v173_v36  ;;  %v190_v3 = vrot.slane %v165_v62, %v173_v36 }
 0x14f   :  { %v200_v4 = vsel %vm199_vm4, %v186_v1, %v198_v2 }
 0x150   :  { %v168_v5 = vpop.permute.xlu0 %167  ;;  %v202_v7 = vsel %vm201_vm5, %v190_v3, %v200_v4 }
 0x151   :  { %v194_v6 = vrot.slane %v168_v5, %v173_v36 }
 0x153   :  { %v204_v8 = vsel %vm203_vm6, %v194_v6, %v202_v7 }
 0x154   :  { %v207_v9 = vsel %vm206_vm7, %v204_v8, 0.0 }
 0x155   :  { %208 = vadd.xlane.f32.xlu1 %v207_v9 }
 0x1e2   :  { %v209_v11 = vpop.xlane.xlu1 %208 }
 0x1e3   :  { %v210_v12 = vadd.f32 %v209_v11, %v89_v10 }
 0x1e5   :  { %212 = vst.msk [vmem:[#allocation2] sm:$0x3f] %vm48_vm1, %v210_v12 }
 0x1ec   :  { %v216_v14 = vld [vmem:[#allocation2] sm:$0x3f] }
 0x1ed   :  { %v219_v15 = vadd.f32 %v218_v13, %v216_v14 }
 0x1ef   :  { %220 = vst.msk [vmem:[%s361_s4] sm:$0x3f] %vm48_vm1, %v219_v15 }
 0x1f0   :  { %225 = vsyncpa [#allocation5], 1 }
 0x1f1   :  { %226 = vsyncpa [#allocation7], 1 }

</bundles_post_ra>
